<compile_context>
chip_gen: v5e
topology: v5e:2x2
jax: 0.10.0
libtpu: 0.0.40
codegen_flags: <defaults>
</compile_context>

<pallas_src>
import math

import jax
import jax.numpy as jnp
from jax import lax
from jax.experimental import pallas as pl
from jax.experimental.pallas import tpu as pltpu


def _mha_flash_kernel(num_heads, emb_size, compute_dtype):
    head_dim = emb_size // num_heads

    def kernel(xq_ref, k_ref, v_ref, wq_ref, bq_ref, wo_ref, bo_ref,
               out_ref, q_ref, acc_ref, m_ref, l_ref):
        ki = pl.program_id(2)
        n_kv = pl.num_programs(2)

        @pl.when(ki == 0)
        def _init():
            m_ref[...] = jnp.full_like(m_ref, -jnp.inf)
            l_ref[...] = jnp.zeros_like(l_ref)
            acc_ref[...] = jnp.zeros_like(acc_ref)
            # Q projection, once per q tile (scale 1/sqrt(E) folded into Wq/bq
            # on the host).  Stored bf16 so the per-step head loop only reads it.
            xq = xq_ref[0]                                            # (tq, E)
            q = (jnp.dot(xq, wq_ref[...], preferred_element_type=jnp.float32)
                 + bq_ref[...])
            q_ref[...] = q.astype(compute_dtype)

        q = q_ref[...]      # (tq, E) bf16, computed at ki == 0
        k = k_ref[0]        # (tk, E) bf16, precomputed K rows
        v = v_ref[0]        # (tk, E) bf16, precomputed V rows

        for h in range(num_heads):
            lo = h * head_dim
            q_h = q[:, lo:lo + head_dim]        # (tq, d)
            k_h = k[:, lo:lo + head_dim]        # (tk, d)
            v_h = v[:, lo:lo + head_dim]        # (tk, d)

            # energy tile = q_h @ k_h^T without materializing a transpose.
            s = lax.dot_general(q_h, k_h, (((1,), (1,)), ((), ())),
                                preferred_element_type=jnp.float32)   # (tq, tk)

            # Online (flash) softmax update for this head.
            m_prev = m_ref[:, h:h + 1]                                # (tq, 1)
            l_prev = l_ref[:, h:h + 1]
            m_new = jnp.maximum(m_prev, jnp.max(s, axis=-1, keepdims=True))
            alpha = jnp.exp(m_prev - m_new)
            p = jnp.exp(s - m_new)
            l_ref[:, h:h + 1] = alpha * l_prev + jnp.sum(p, axis=-1, keepdims=True)
            m_ref[:, h:h + 1] = m_new
            # Dropout (self.att_drop) is identity in eval mode.
            # TODO(synk): torch.save(att, ...) side effect has no Pallas equivalent.

            # Unnormalized att @ v accumulated into the head-major scratch:
            # full-block store, no lane-partial masking.
            pv = jnp.dot(p.astype(compute_dtype), v_h,
                         preferred_element_type=jnp.float32)          # (tq, d)
            acc_ref[h] = alpha * acc_ref[h] + pv

        @pl.when(ki == n_kv - 1)
        def _finalize():
            # Normalize each head once (tq*E elements) and project:
            # out = sum_h (acc[h] / l[h]) @ Wo[h] + bo, with Wo stored (H, d, E).
            out = None
            for h in range(num_heads):
                inv_l = pl.reciprocal(l_ref[:, h:h + 1], approx=False)  # (tq, 1)
                head_out = (acc_ref[h] * inv_l).astype(compute_dtype)   # (tq, d)
                contrib = jnp.dot(head_out, wo_ref[h],
                                  preferred_element_type=jnp.float32)   # (tq, E)
                out = contrib if out is None else out + contrib
            out = out + bo_ref[...]
            out_ref[0] = out.astype(out_ref.dtype)

    return kernel


def multi_head_attention(x, params, num_heads, *, q_tile=256, kv_tile=256,
                         compute_dtype=jnp.bfloat16, out_dtype=jnp.bfloat16,
                         vmem_limit_bytes=48 * 1024 * 1024):
    """x: (B, N, E) float32. params: dict of pre-transposed f32 weights/biases.

    Tiling notes: q_tile/kv_tile of 256 match the 256x256 MXU on v6e/v7x; on
    v5e 128 already matches its 128x128 MXU.  On v5e/v6e (128 MiB VMEM) q_tile
    up to 512 with vmem_limit_bytes ~96-112 MiB further cuts K/V re-streaming.
    """
    B, N, E = x.shape
    assert E % num_heads == 0
    head_dim = E // num_heads

    tq = min(q_tile, N)
    tk = min(kv_tile, N)
    # v7x megacore: make sure at least 2 parallel work units exist when possible.
    if B * (N // tq) < 2 and tq % 2 == 0 and (tq // 2) % 8 == 0:
        tq //= 2
    assert N % tq == 0 and N % tk == 0, "sequence length must divide the tiles"

    # ---- Host-side prep ------------------------------------------------------
    # Fold the 1/sqrt(E) attention scale into Wq/bq (matches emb_size ** 0.5).
    scaling = math.sqrt(float(E))
    wq = (params["wq"] / scaling).astype(compute_dtype)
    bq = (params["bq"] / scaling).astype(jnp.float32)
    # Output projection reshaped head-major so the kernel's per-head finalize
    # matmuls read contiguous (d, E) blocks.
    wo = params["wo"].reshape(num_heads, head_dim, E).astype(compute_dtype)
    bo = params["bo"].astype(jnp.float32)
    # K/V projections: one fused XLA GEMM, done once (not once per q tile).
    wkv = jnp.concatenate([params["wk"], params["wv"]], axis=1)       # (E, 2E)
    bkv = jnp.concatenate([params["bk"], params["bv"]], axis=1)[0]    # (2E,)
    kv = jnp.einsum("bne,ef->bnf", x, wkv) + bkv                      # f32
    k_all = kv[..., :E].astype(compute_dtype)                         # (B, N, E)
    v_all = kv[..., E:].astype(compute_dtype)                         # (B, N, E)
    x_c = x.astype(compute_dtype)

    grid = (B, N // tq, N // tk)
    kernel = _mha_flash_kernel(num_heads, E, compute_dtype)

    # Resident weights: constant block index -> single-buffer them so their
    # VMEM footprint is not doubled (decisive on v7x's 64 MiB VMEM).
    def weight_spec(shape):
        return pl.BlockSpec(shape, lambda b, qi, ki, _n=len(shape): (0,) * _n,
                            pipeline_mode=pl.Buffered(1))

    return pl.pallas_call(
        kernel,
        out_shape=jax.ShapeDtypeStruct((B, N, E), out_dtype),
        grid_spec=pltpu.PrefetchScalarGridSpec(
            num_scalar_prefetch=0,
            grid=grid,
            in_specs=[
                pl.BlockSpec((1, tq, E), lambda b, qi, ki: (b, qi, 0)),   # x (query rows)
                pl.BlockSpec((1, tk, E), lambda b, qi, ki: (b, ki, 0)),   # K rows (precomputed)
                pl.BlockSpec((1, tk, E), lambda b, qi, ki: (b, ki, 0)),   # V rows (precomputed)
                weight_spec((E, E)),                                      # Wq (pre-scaled)
                weight_spec((1, E)),                                      # bq (pre-scaled)
                weight_spec((num_heads, head_dim, E)),                    # Wo (head-major)
                weight_spec((1, E)),                                      # bo
            ],
            out_specs=pl.BlockSpec((1, tq, E), lambda b, qi, ki: (b, qi, 0)),
            scratch_shapes=[
                pltpu.VMEM((tq, E), compute_dtype),                       # Q (per q tile)
                pltpu.VMEM((num_heads, tq, head_dim), jnp.float32),       # flash accumulator
                pltpu.VMEM((tq, num_heads), jnp.float32),                 # running max
                pltpu.VMEM((tq, num_heads), jnp.float32),                 # running sum
            ],
        ),
        compiler_params=pltpu.CompilerParams(
            dimension_semantics=("parallel", "parallel", "arbitrary"),
            vmem_limit_bytes=vmem_limit_bytes,
        ),
    )(x_c, k_all, v_all, wq, bq, wo, bo)


def init_params(key, emb_size):
    """Deterministic nn.Linear-style init; weights stored as (E_in, E_out)."""
    ks = jax.random.split(key, 8)
    bound = 1.0 / math.sqrt(emb_size)

    def lin(kw, kb):
        w = jax.random.uniform(kw, (emb_size, emb_size), jnp.float32, -bound, bound)
        b = jax.random.uniform(kb, (1, emb_size), jnp.float32, -bound, bound)
        return w, b

    wq, bq = lin(ks[0], ks[1])
    wk, bk = lin(ks[2], ks[3])
    wv, bv = lin(ks[4], ks[5])
    wo, bo = lin(ks[6], ks[7])
    return dict(wq=wq, bq=bq, wk=wk, bk=bk, wv=wv, bv=bv, wo=wo, bo=bo)


def reference_mha(x, params, num_heads):
    """Pure-JAX f32 reference mirroring the PyTorch forward (eval, no mask)."""
    B, N, E = x.shape
    d = E // num_heads

    def proj(w, b):
        y = jnp.einsum("bne,ef->bnf", x, w) + b[0]
        return y.reshape(B, N, num_heads, d).transpose(0, 2, 1, 3)  # b h n d

    q = proj(params["wq"], params["bq"])
    k = proj(params["wk"], params["bk"])
    v = proj(params["wv"], params["bv"])
    energy = jnp.einsum("bhqd,bhkd->bhqk", q, k)
    att = jax.nn.softmax(energy / math.sqrt(float(E)), axis=-1)
    out = jnp.einsum("bhal,bhlv->bhav", att, v)
    out = out.transpose(0, 2, 1, 3).reshape(B, N, E)
    return jnp.einsum("bne,ef->bnf", out, params["wo"]) + params["bo"][0]


if __name__ == "__main__":
    B, N, E, H = 2, 8, 32, 4

    key = jax.random.PRNGKey(0)
    k_x, k_p = jax.random.split(key)
    x = jax.random.normal(k_x, (B, N, E), dtype=jnp.float32)
    params = init_params(k_p, E)

    out = multi_head_attention(x, params, H)
    out = jax.block_until_ready(out)

    ref = reference_mha(x, params, H)
    assert out.shape == (B, N, E)
    # bf16 operands/output (f32 accumulation) vs. the f32 reference.
    err = float(jnp.max(jnp.abs(out.astype(jnp.float32) - ref)))
    tol = 0.05 * float(jnp.max(jnp.abs(ref))) + 0.02
    assert err <= tol, f"mismatch vs reference: max_err={err}, tol={tol}"

    print("KERNEL_OK")
</pallas_src>

<mosaic_0001>
module attributes {stable_mosaic.version = 11 : i64} {
  func.func @kernel(%arg0: i32, %arg1: i32, %arg2: i32, %arg3: memref<1x8x32xbf16, #tpu.memory_space<vmem>>, %arg4: memref<1x8x32xbf16, #tpu.memory_space<vmem>>, %arg5: memref<1x8x32xbf16, #tpu.memory_space<vmem>>, %arg6: memref<32x32xbf16, #tpu.memory_space<vmem>>, %arg7: memref<1x32xf32, #tpu.memory_space<vmem>>, %arg8: memref<4x8x32xbf16, #tpu.memory_space<vmem>>, %arg9: memref<1x32xf32, #tpu.memory_space<vmem>>, %arg10: memref<1x8x32xbf16, #tpu.memory_space<vmem>>, %arg11: memref<8x32xbf16, #tpu.memory_space<vmem>>, %arg12: memref<4x8x8xf32, #tpu.memory_space<vmem>>, %arg13: memref<8x4xf32, #tpu.memory_space<vmem>>, %arg14: memref<8x4xf32, #tpu.memory_space<vmem>>) attributes {dimension_semantics = [#tpu.dimension_semantics<parallel>, #tpu.dimension_semantics<parallel>, #tpu.dimension_semantics<arbitrary>], iteration_bounds = array<i64: 2, 1, 1>, scalar_prefetch = 0 : i64, scratch_operands = 4 : i64, tpu.core_type = #tpu.core_type<tc>, window_params = [{transform_indices = @transform_0, window_bounds = array<i64: 1, 8, 32>}, {transform_indices = @transform_1, window_bounds = array<i64: 1, 8, 32>}, {transform_indices = @transform_2, window_bounds = array<i64: 1, 8, 32>}, {pipeline_mode = #tpu.pipeline_mode<synchronous>, transform_indices = @transform_3, window_bounds = array<i64: 32, 32>}, {pipeline_mode = #tpu.pipeline_mode<synchronous>, transform_indices = @transform_4, window_bounds = array<i64: 1, 32>}, {pipeline_mode = #tpu.pipeline_mode<synchronous>, transform_indices = @transform_5, window_bounds = array<i64: 4, 8, 32>}, {pipeline_mode = #tpu.pipeline_mode<synchronous>, transform_indices = @transform_6, window_bounds = array<i64: 1, 32>}, {transform_indices = @transform_7, window_bounds = array<i64: 1, 8, 32>}]} {
    %c0_i32 = arith.constant 0 : i32
    %0 = arith.cmpi eq, %arg2, %c0_i32 : i32
    %1 = arith.extui %0 : i1 to i32
    %c0_i32_0 = arith.constant 0 : i32
    %2 = arith.cmpi ne, %1, %c0_i32_0 : i32
    scf.if %2 {
      %cst_78 = arith.constant 0xFF800000 : f32
      %131 = vector.broadcast %cst_78 : f32 to vector<8x4xf32>
      %c0_79 = arith.constant 0 : index
      %c0_80 = arith.constant 0 : index
      %132 = vector.load %arg13[%c0_79, %c0_80] : memref<8x4xf32, #tpu.memory_space<vmem>>, vector<8x4xf32>
      tpu.vector_store %arg13[%c0_79, %c0_80], %131 {strides = array<i32>} : memref<8x4xf32, #tpu.memory_space<vmem>>, vector<8x4xf32>,
      %cst_81 = arith.constant 0.000000e+00 : f32
      %133 = vector.broadcast %cst_81 : f32 to vector<8x4xf32>
      %c0_82 = arith.constant 0 : index
      %c0_83 = arith.constant 0 : index
      %134 = vector.load %arg14[%c0_82, %c0_83] : memref<8x4xf32, #tpu.memory_space<vmem>>, vector<8x4xf32>
      tpu.vector_store %arg14[%c0_82, %c0_83], %133 {strides = array<i32>} : memref<8x4xf32, #tpu.memory_space<vmem>>, vector<8x4xf32>,
      %cst_84 = arith.constant 0.000000e+00 : f32
      %135 = vector.broadcast %cst_84 : f32 to vector<4x8x8xf32>
      %c0_85 = arith.constant 0 : index
      %c0_86 = arith.constant 0 : index
      %c0_87 = arith.constant 0 : index
      %136 = vector.load %arg12[%c0_85, %c0_86, %c0_87] : memref<4x8x8xf32, #tpu.memory_space<vmem>>, vector<4x8x8xf32>
      tpu.vector_store %arg12[%c0_85, %c0_86, %c0_87], %135 {strides = array<i32>} : memref<4x8x8xf32, #tpu.memory_space<vmem>>, vector<4x8x8xf32>,
      %c0_88 = arith.constant 0 : index
      %c0_89 = arith.constant 0 : index
      %c0_90 = arith.constant 0 : index
      %137 = vector.load %arg3[%c0_88, %c0_89, %c0_90] : memref<1x8x32xbf16, #tpu.memory_space<vmem>>, vector<1x8x32xbf16>
      %138 = vector.shape_cast %137 : vector<1x8x32xbf16> to vector<8x32xbf16>
      %c0_91 = arith.constant 0 : index
      %c0_92 = arith.constant 0 : index
      %139 = vector.load %arg6[%c0_91, %c0_92] : memref<32x32xbf16, #tpu.memory_space<vmem>>, vector<32x32xbf16>
      %cst_93 = arith.constant dense<0.000000e+00> : vector<8x32xf32>
      %140 = tpu.matmul %138, %139, %cst_93 {dimension_numbers = #tpu.dot_dimension_numbers<[1], [0], [0], [1], [0, 0, 1, 1], [], []>} : vector<8x32xbf16>, vector<32x32xbf16>, vector<8x32xf32> -> vector<8x32xf32>
      %c0_94 = arith.constant 0 : index
      %c0_95 = arith.constant 0 : index
      %141 = vector.load %arg7[%c0_94, %c0_95] : memref<1x32xf32, #tpu.memory_space<vmem>>, vector<1x32xf32>
      %142 = vector.broadcast %141 : vector<1x32xf32> to vector<8x32xf32>
      %143 = arith.addf %140, %142 : vector<8x32xf32>
      %144 = arith.truncf %143 : vector<8x32xf32> to vector<8x32xbf16>
      %c0_96 = arith.constant 0 : index
      %c0_97 = arith.constant 0 : index
      %145 = vector.load %arg11[%c0_96, %c0_97] : memref<8x32xbf16, #tpu.memory_space<vmem>>, vector<8x32xbf16>
      tpu.vector_store %arg11[%c0_96, %c0_97], %144 {strides = array<i32>} : memref<8x32xbf16, #tpu.memory_space<vmem>>, vector<8x32xbf16>,
    } else {
    }
    %c0 = arith.constant 0 : index
    %c0_1 = arith.constant 0 : index
    %3 = vector.load %arg11[%c0, %c0_1] : memref<8x32xbf16, #tpu.memory_space<vmem>>, vector<8x32xbf16>
    %c0_2 = arith.constant 0 : index
    %c0_3 = arith.constant 0 : index
    %c0_4 = arith.constant 0 : index
    %4 = vector.load %arg4[%c0_2, %c0_3, %c0_4] : memref<1x8x32xbf16, #tpu.memory_space<vmem>>, vector<1x8x32xbf16>
    %5 = vector.shape_cast %4 : vector<1x8x32xbf16> to vector<8x32xbf16>
    %c0_5 = arith.constant 0 : index
    %c0_6 = arith.constant 0 : index
    %c0_7 = arith.constant 0 : index
    %6 = vector.load %arg5[%c0_5, %c0_6, %c0_7] : memref<1x8x32xbf16, #tpu.memory_space<vmem>>, vector<1x8x32xbf16>
    %7 = vector.shape_cast %6 : vector<1x8x32xbf16> to vector<8x32xbf16>
    %8 = vector.extract_strided_slice %3 {offsets = [0, 0], sizes = [8, 8], strides = [1, 1]} : vector<8x32xbf16> to vector<8x8xbf16>
    %9 = vector.extract_strided_slice %5 {offsets = [0, 0], sizes = [8, 8], strides = [1, 1]} : vector<8x32xbf16> to vector<8x8xbf16>
    %10 = vector.extract_strided_slice %7 {offsets = [0, 0], sizes = [8, 8], strides = [1, 1]} : vector<8x32xbf16> to vector<8x8xbf16>
    %cst = arith.constant dense<0.000000e+00> : vector<8x8xf32>
    %11 = tpu.matmul %8, %9, %cst {dimension_numbers = #tpu.dot_dimension_numbers<[1], [1], [0], [0], [0, 0, 1, 0], [], []>} : vector<8x8xbf16>, vector<8x8xbf16>, vector<8x8xf32> -> vector<8x8xf32>
    %c0_8 = arith.constant 0 : index
    %c0_9 = arith.constant 0 : index
    %12 = vector.load %arg13[%c0_8, %c0_9] : memref<8x4xf32, #tpu.memory_space<vmem>>, vector<8x1xf32>
    %c0_10 = arith.constant 0 : index
    %c0_11 = arith.constant 0 : index
    %13 = vector.load %arg14[%c0_10, %c0_11] : memref<8x4xf32, #tpu.memory_space<vmem>>, vector<8x1xf32>
    %cst_12 = arith.constant dense<0xFF800000> : vector<8xf32>
    %14 = vector.multi_reduction <maximumf>, %11, %cst_12 [1] : vector<8x8xf32> to vector<8xf32>
    %15 = vector.shape_cast %14 : vector<8xf32> to vector<8x1xf32>
    %16 = arith.maximumf %12, %15 : vector<8x1xf32>
    %17 = arith.subf %12, %16 : vector<8x1xf32>
    %18 = math.exp %17 : vector<8x1xf32>
    %19 = vector.broadcast %16 : vector<8x1xf32> to vector<8x8xf32>
    %20 = arith.subf %11, %19 : vector<8x8xf32>
    %21 = math.exp %20 : vector<8x8xf32>
    %22 = arith.mulf %18, %13 : vector<8x1xf32>
    %cst_13 = arith.constant dense<0.000000e+00> : vector<8xf32>
    %23 = vector.multi_reduction <add>, %21, %cst_13 [1] : vector<8x8xf32> to vector<8xf32>
    %24 = vector.shape_cast %23 : vector<8xf32> to vector<8x1xf32>
    %25 = arith.addf %22, %24 : vector<8x1xf32>
    %c0_14 = arith.constant 0 : index
    %c0_15 = arith.constant 0 : index
    %26 = vector.load %arg14[%c0_14, %c0_15] : memref<8x4xf32, #tpu.memory_space<vmem>>, vector<8x1xf32>
    tpu.vector_store %arg14[%c0_14, %c0_15], %25 {strides = array<i32>} : memref<8x4xf32, #tpu.memory_space<vmem>>, vector<8x1xf32>,
    %c0_16 = arith.constant 0 : index
    %c0_17 = arith.constant 0 : index
    %27 = vector.load %arg13[%c0_16, %c0_17] : memref<8x4xf32, #tpu.memory_space<vmem>>, vector<8x1xf32>
    tpu.vector_store %arg13[%c0_16, %c0_17], %16 {strides = array<i32>} : memref<8x4xf32, #tpu.memory_space<vmem>>, vector<8x1xf32>,
    %28 = arith.truncf %21 : vector<8x8xf32> to vector<8x8xbf16>
    %cst_18 = arith.constant dense<0.000000e+00> : vector<8x8xf32>
    %29 = tpu.matmul %28, %10, %cst_18 {dimension_numbers = #tpu.dot_dimension_numbers<[1], [0], [0], [1], [0, 0, 1, 1], [], []>} : vector<8x8xbf16>, vector<8x8xbf16>, vector<8x8xf32> -> vector<8x8xf32>
    %c0_19 = arith.constant 0 : index
    %c0_20 = arith.constant 0 : index
    %c0_21 = arith.constant 0 : index
    %30 = vector.load %arg12[%c0_19, %c0_20, %c0_21] : memref<4x8x8xf32, #tpu.memory_space<vmem>>, vector<1x8x8xf32>
    %31 = vector.shape_cast %30 : vector<1x8x8xf32> to vector<8x8xf32>
    %32 = vector.broadcast %18 : vector<8x1xf32> to vector<8x8xf32>
    %33 = arith.mulf %32, %31 : vector<8x8xf32>
    %34 = arith.addf %33, %29 : vector<8x8xf32>
    %c0_22 = arith.constant 0 : index
    %c0_23 = arith.constant 0 : index
    %c0_24 = arith.constant 0 : index
    %35 = vector.load %arg12[%c0_22, %c0_23, %c0_24] : memref<4x8x8xf32, #tpu.memory_space<vmem>>, vector<1x8x8xf32>
    %36 = vector.shape_cast %35 : vector<1x8x8xf32> to vector<8x8xf32>
    %37 = vector.shape_cast %34 : vector<8x8xf32> to vector<1x8x8xf32>
    tpu.vector_store %arg12[%c0_22, %c0_23, %c0_24], %37 {strides = array<i32>} : memref<4x8x8xf32, #tpu.memory_space<vmem>>, vector<1x8x8xf32>,
    %38 = vector.extract_strided_slice %3 {offsets = [0, 8], sizes = [8, 8], strides = [1, 1]} : vector<8x32xbf16> to vector<8x8xbf16>
    %39 = vector.extract_strided_slice %5 {offsets = [0, 8], sizes = [8, 8], strides = [1, 1]} : vector<8x32xbf16> to vector<8x8xbf16>
    %40 = vector.extract_strided_slice %7 {offsets = [0, 8], sizes = [8, 8], strides = [1, 1]} : vector<8x32xbf16> to vector<8x8xbf16>
    %cst_25 = arith.constant dense<0.000000e+00> : vector<8x8xf32>
    %41 = tpu.matmul %38, %39, %cst_25 {dimension_numbers = #tpu.dot_dimension_numbers<[1], [1], [0], [0], [0, 0, 1, 0], [], []>} : vector<8x8xbf16>, vector<8x8xbf16>, vector<8x8xf32> -> vector<8x8xf32>
    %c0_26 = arith.constant 0 : index
    %c1 = arith.constant 1 : index
    %42 = vector.load %arg13[%c0_26, %c1] : memref<8x4xf32, #tpu.memory_space<vmem>>, vector<8x1xf32>
    %c0_27 = arith.constant 0 : index
    %c1_28 = arith.constant 1 : index
    %43 = vector.load %arg14[%c0_27, %c1_28] : memref<8x4xf32, #tpu.memory_space<vmem>>, vector<8x1xf32>
    %cst_29 = arith.constant dense<0xFF800000> : vector<8xf32>
    %44 = vector.multi_reduction <maximumf>, %41, %cst_29 [1] : vector<8x8xf32> to vector<8xf32>
    %45 = vector.shape_cast %44 : vector<8xf32> to vector<8x1xf32>
    %46 = arith.maximumf %42, %45 : vector<8x1xf32>
    %47 = arith.subf %42, %46 : vector<8x1xf32>
    %48 = math.exp %47 : vector<8x1xf32>
    %49 = vector.broadcast %46 : vector<8x1xf32> to vector<8x8xf32>
    %50 = arith.subf %41, %49 : vector<8x8xf32>
    %51 = math.exp %50 : vector<8x8xf32>
    %52 = arith.mulf %48, %43 : vector<8x1xf32>
    %cst_30 = arith.constant dense<0.000000e+00> : vector<8xf32>
    %53 = vector.multi_reduction <add>, %51, %cst_30 [1] : vector<8x8xf32> to vector<8xf32>
    %54 = vector.shape_cast %53 : vector<8xf32> to vector<8x1xf32>
    %55 = arith.addf %52, %54 : vector<8x1xf32>
    %c0_31 = arith.constant 0 : index
    %c1_32 = arith.constant 1 : index
    %56 = vector.load %arg14[%c0_31, %c1_32] : memref<8x4xf32, #tpu.memory_space<vmem>>, vector<8x1xf32>
    tpu.vector_store %arg14[%c0_31, %c1_32], %55 {strides = array<i32>} : memref<8x4xf32, #tpu.memory_space<vmem>>, vector<8x1xf32>,
    %c0_33 = arith.constant 0 : index
    %c1_34 = arith.constant 1 : index
    %57 = vector.load %arg13[%c0_33, %c1_34] : memref<8x4xf32, #tpu.memory_space<vmem>>, vector<8x1xf32>
    tpu.vector_store %arg13[%c0_33, %c1_34], %46 {strides = array<i32>} : memref<8x4xf32, #tpu.memory_space<vmem>>, vector<8x1xf32>,
    %58 = arith.truncf %51 : vector<8x8xf32> to vector<8x8xbf16>
    %cst_35 = arith.constant dense<0.000000e+00> : vector<8x8xf32>
    %59 = tpu.matmul %58, %40, %cst_35 {dimension_numbers = #tpu.dot_dimension_numbers<[1], [0], [0], [1], [0, 0, 1, 1], [], []>} : vector<8x8xbf16>, vector<8x8xbf16>, vector<8x8xf32> -> vector<8x8xf32>
    %c1_36 = arith.constant 1 : index
    %c0_37 = arith.constant 0 : index
    %c0_38 = arith.constant 0 : index
    %60 = vector.load %arg12[%c1_36, %c0_37, %c0_38] : memref<4x8x8xf32, #tpu.memory_space<vmem>>, vector<1x8x8xf32>
    %61 = vector.shape_cast %60 : vector<1x8x8xf32> to vector<8x8xf32>
    %62 = vector.broadcast %48 : vector<8x1xf32> to vector<8x8xf32>
    %63 = arith.mulf %62, %61 : vector<8x8xf32>
    %64 = arith.addf %63, %59 : vector<8x8xf32>
    %c1_39 = arith.constant 1 : index
    %c0_40 = arith.constant 0 : index
    %c0_41 = arith.constant 0 : index
    %65 = vector.load %arg12[%c1_39, %c0_40, %c0_41] : memref<4x8x8xf32, #tpu.memory_space<vmem>>, vector<1x8x8xf32>
    %66 = vector.shape_cast %65 : vector<1x8x8xf32> to vector<8x8xf32>
    %67 = vector.shape_cast %64 : vector<8x8xf32> to vector<1x8x8xf32>
    tpu.vector_store %arg12[%c1_39, %c0_40, %c0_41], %67 {strides = array<i32>} : memref<4x8x8xf32, #tpu.memory_space<vmem>>, vector<1x8x8xf32>,
    %68 = vector.extract_strided_slice %3 {offsets = [0, 16], sizes = [8, 8], strides = [1, 1]} : vector<8x32xbf16> to vector<8x8xbf16>
    %69 = vector.extract_strided_slice %5 {offsets = [0, 16], sizes = [8, 8], strides = [1, 1]} : vector<8x32xbf16> to vector<8x8xbf16>
    %70 = vector.extract_strided_slice %7 {offsets = [0, 16], sizes = [8, 8], strides = [1, 1]} : vector<8x32xbf16> to vector<8x8xbf16>
    %cst_42 = arith.constant dense<0.000000e+00> : vector<8x8xf32>
    %71 = tpu.matmul %68, %69, %cst_42 {dimension_numbers = #tpu.dot_dimension_numbers<[1], [1], [0], [0], [0, 0, 1, 0], [], []>} : vector<8x8xbf16>, vector<8x8xbf16>, vector<8x8xf32> -> vector<8x8xf32>
    %c0_43 = arith.constant 0 : index
    %c2 = arith.constant 2 : index
    %72 = vector.load %arg13[%c0_43, %c2] : memref<8x4xf32, #tpu.memory_space<vmem>>, vector<8x1xf32>
    %c0_44 = arith.constant 0 : index
    %c2_45 = arith.constant 2 : index
    %73 = vector.load %arg14[%c0_44, %c2_45] : memref<8x4xf32, #tpu.memory_space<vmem>>, vector<8x1xf32>
    %cst_46 = arith.constant dense<0xFF800000> : vector<8xf32>
    %74 = vector.multi_reduction <maximumf>, %71, %cst_46 [1] : vector<8x8xf32> to vector<8xf32>
    %75 = vector.shape_cast %74 : vector<8xf32> to vector<8x1xf32>
    %76 = arith.maximumf %72, %75 : vector<8x1xf32>
    %77 = arith.subf %72, %76 : vector<8x1xf32>
    %78 = math.exp %77 : vector<8x1xf32>
    %79 = vector.broadcast %76 : vector<8x1xf32> to vector<8x8xf32>
    %80 = arith.subf %71, %79 : vector<8x8xf32>
    %81 = math.exp %80 : vector<8x8xf32>
    %82 = arith.mulf %78, %73 : vector<8x1xf32>
    %cst_47 = arith.constant dense<0.000000e+00> : vector<8xf32>
    %83 = vector.multi_reduction <add>, %81, %cst_47 [1] : vector<8x8xf32> to vector<8xf32>
    %84 = vector.shape_cast %83 : vector<8xf32> to vector<8x1xf32>
    %85 = arith.addf %82, %84 : vector<8x1xf32>
    %c0_48 = arith.constant 0 : index
    %c2_49 = arith.constant 2 : index
    %86 = vector.load %arg14[%c0_48, %c2_49] : memref<8x4xf32, #tpu.memory_space<vmem>>, vector<8x1xf32>
    tpu.vector_store %arg14[%c0_48, %c2_49], %85 {strides = array<i32>} : memref<8x4xf32, #tpu.memory_space<vmem>>, vector<8x1xf32>,
    %c0_50 = arith.constant 0 : index
    %c2_51 = arith.constant 2 : index
    %87 = vector.load %arg13[%c0_50, %c2_51] : memref<8x4xf32, #tpu.memory_space<vmem>>, vector<8x1xf32>
    tpu.vector_store %arg13[%c0_50, %c2_51], %76 {strides = array<i32>} : memref<8x4xf32, #tpu.memory_space<vmem>>, vector<8x1xf32>,
    %88 = arith.truncf %81 : vector<8x8xf32> to vector<8x8xbf16>
    %cst_52 = arith.constant dense<0.000000e+00> : vector<8x8xf32>
    %89 = tpu.matmul %88, %70, %cst_52 {dimension_numbers = #tpu.dot_dimension_numbers<[1], [0], [0], [1], [0, 0, 1, 1], [], []>} : vector<8x8xbf16>, vector<8x8xbf16>, vector<8x8xf32> -> vector<8x8xf32>
    %c2_53 = arith.constant 2 : index
    %c0_54 = arith.constant 0 : index
    %c0_55 = arith.constant 0 : index
    %90 = vector.load %arg12[%c2_53, %c0_54, %c0_55] : memref<4x8x8xf32, #tpu.memory_space<vmem>>, vector<1x8x8xf32>
    %91 = vector.shape_cast %90 : vector<1x8x8xf32> to vector<8x8xf32>
    %92 = vector.broadcast %78 : vector<8x1xf32> to vector<8x8xf32>
    %93 = arith.mulf %92, %91 : vector<8x8xf32>
    %94 = arith.addf %93, %89 : vector<8x8xf32>
    %c2_56 = arith.constant 2 : index
    %c0_57 = arith.constant 0 : index
    %c0_58 = arith.constant 0 : index
    %95 = vector.load %arg12[%c2_56, %c0_57, %c0_58] : memref<4x8x8xf32, #tpu.memory_space<vmem>>, vector<1x8x8xf32>
    %96 = vector.shape_cast %95 : vector<1x8x8xf32> to vector<8x8xf32>
    %97 = vector.shape_cast %94 : vector<8x8xf32> to vector<1x8x8xf32>
    tpu.vector_store %arg12[%c2_56, %c0_57, %c0_58], %97 {strides = array<i32>} : memref<4x8x8xf32, #tpu.memory_space<vmem>>, vector<1x8x8xf32>,
    %98 = vector.extract_strided_slice %3 {offsets = [0, 24], sizes = [8, 8], strides = [1, 1]} : vector<8x32xbf16> to vector<8x8xbf16>
    %99 = vector.extract_strided_slice %5 {offsets = [0, 24], sizes = [8, 8], strides = [1, 1]} : vector<8x32xbf16> to vector<8x8xbf16>
    %100 = vector.extract_strided_slice %7 {offsets = [0, 24], sizes = [8, 8], strides = [1, 1]} : vector<8x32xbf16> to vector<8x8xbf16>
    %cst_59 = arith.constant dense<0.000000e+00> : vector<8x8xf32>
    %101 = tpu.matmul %98, %99, %cst_59 {dimension_numbers = #tpu.dot_dimension_numbers<[1], [1], [0], [0], [0, 0, 1, 0], [], []>} : vector<8x8xbf16>, vector<8x8xbf16>, vector<8x8xf32> -> vector<8x8xf32>
    %c0_60 = arith.constant 0 : index
    %c3 = arith.constant 3 : index
    %102 = vector.load %arg13[%c0_60, %c3] : memref<8x4xf32, #tpu.memory_space<vmem>>, vector<8x1xf32>
    %c0_61 = arith.constant 0 : index
    %c3_62 = arith.constant 3 : index
    %103 = vector.load %arg14[%c0_61, %c3_62] : memref<8x4xf32, #tpu.memory_space<vmem>>, vector<8x1xf32>
    %cst_63 = arith.constant dense<0xFF800000> : vector<8xf32>
    %104 = vector.multi_reduction <maximumf>, %101, %cst_63 [1] : vector<8x8xf32> to vector<8xf32>
    %105 = vector.shape_cast %104 : vector<8xf32> to vector<8x1xf32>
    %106 = arith.maximumf %102, %105 : vector<8x1xf32>
    %107 = arith.subf %102, %106 : vector<8x1xf32>
    %108 = math.exp %107 : vector<8x1xf32>
    %109 = vector.broadcast %106 : vector<8x1xf32> to vector<8x8xf32>
    %110 = arith.subf %101, %109 : vector<8x8xf32>
    %111 = math.exp %110 : vector<8x8xf32>
    %112 = arith.mulf %108, %103 : vector<8x1xf32>
    %cst_64 = arith.constant dense<0.000000e+00> : vector<8xf32>
    %113 = vector.multi_reduction <add>, %111, %cst_64 [1] : vector<8x8xf32> to vector<8xf32>
    %114 = vector.shape_cast %113 : vector<8xf32> to vector<8x1xf32>
    %115 = arith.addf %112, %114 : vector<8x1xf32>
    %c0_65 = arith.constant 0 : index
    %c3_66 = arith.constant 3 : index
    %116 = vector.load %arg14[%c0_65, %c3_66] : memref<8x4xf32, #tpu.memory_space<vmem>>, vector<8x1xf32>
    tpu.vector_store %arg14[%c0_65, %c3_66], %115 {strides = array<i32>} : memref<8x4xf32, #tpu.memory_space<vmem>>, vector<8x1xf32>,
    %c0_67 = arith.constant 0 : index
    %c3_68 = arith.constant 3 : index
    %117 = vector.load %arg13[%c0_67, %c3_68] : memref<8x4xf32, #tpu.memory_space<vmem>>, vector<8x1xf32>
    tpu.vector_store %arg13[%c0_67, %c3_68], %106 {strides = array<i32>} : memref<8x4xf32, #tpu.memory_space<vmem>>, vector<8x1xf32>,
    %118 = arith.truncf %111 : vector<8x8xf32> to vector<8x8xbf16>
    %cst_69 = arith.constant dense<0.000000e+00> : vector<8x8xf32>
    %119 = tpu.matmul %118, %100, %cst_69 {dimension_numbers = #tpu.dot_dimension_numbers<[1], [0], [0], [1], [0, 0, 1, 1], [], []>} : vector<8x8xbf16>, vector<8x8xbf16>, vector<8x8xf32> -> vector<8x8xf32>
    %c3_70 = arith.constant 3 : index
    %c0_71 = arith.constant 0 : index
    %c0_72 = arith.constant 0 : index
    %120 = vector.load %arg12[%c3_70, %c0_71, %c0_72] : memref<4x8x8xf32, #tpu.memory_space<vmem>>, vector<1x8x8xf32>
    %121 = vector.shape_cast %120 : vector<1x8x8xf32> to vector<8x8xf32>
    %122 = vector.broadcast %108 : vector<8x1xf32> to vector<8x8xf32>
    %123 = arith.mulf %122, %121 : vector<8x8xf32>
    %124 = arith.addf %123, %119 : vector<8x8xf32>
    %c3_73 = arith.constant 3 : index
    %c0_74 = arith.constant 0 : index
    %c0_75 = arith.constant 0 : index
    %125 = vector.load %arg12[%c3_73, %c0_74, %c0_75] : memref<4x8x8xf32, #tpu.memory_space<vmem>>, vector<1x8x8xf32>
    %126 = vector.shape_cast %125 : vector<1x8x8xf32> to vector<8x8xf32>
    %127 = vector.shape_cast %124 : vector<8x8xf32> to vector<1x8x8xf32>
    tpu.vector_store %arg12[%c3_73, %c0_74, %c0_75], %127 {strides = array<i32>} : memref<4x8x8xf32, #tpu.memory_space<vmem>>, vector<1x8x8xf32>,
    %c0_i32_76 = arith.constant 0 : i32
    %128 = arith.cmpi eq, %arg2, %c0_i32_76 : i32
    %129 = arith.extui %128 : i1 to i32
    %c0_i32_77 = arith.constant 0 : i32
    %130 = arith.cmpi ne, %129, %c0_i32_77 : i32
    scf.if %130 {
      %c0_78 = arith.constant 0 : index
      %c0_79 = arith.constant 0 : index
      %131 = vector.load %arg14[%c0_78, %c0_79] : memref<8x4xf32, #tpu.memory_space<vmem>>, vector<8x1xf32>
      %132 = tpu.reciprocal %131 : vector<8x1xf32> -> vector<8x1xf32>
      %c0_80 = arith.constant 0 : index
      %c0_81 = arith.constant 0 : index
      %c0_82 = arith.constant 0 : index
      %133 = vector.load %arg12[%c0_80, %c0_81, %c0_82] : memref<4x8x8xf32, #tpu.memory_space<vmem>>, vector<1x8x8xf32>
      %134 = vector.shape_cast %133 : vector<1x8x8xf32> to vector<8x8xf32>
      %135 = vector.broadcast %132 : vector<8x1xf32> to vector<8x8xf32>
      %136 = arith.mulf %134, %135 : vector<8x8xf32>
      %137 = arith.truncf %136 : vector<8x8xf32> to vector<8x8xbf16>
      %c0_83 = arith.constant 0 : index
      %c0_84 = arith.constant 0 : index
      %c0_85 = arith.constant 0 : index
      %138 = vector.load %arg8[%c0_83, %c0_84, %c0_85] : memref<4x8x32xbf16, #tpu.memory_space<vmem>>, vector<1x8x32xbf16>
      %139 = vector.shape_cast %138 : vector<1x8x32xbf16> to vector<8x32xbf16>
      %cst_86 = arith.constant dense<0.000000e+00> : vector<8x32xf32>
      %140 = tpu.matmul %137, %139, %cst_86 {dimension_numbers = #tpu.dot_dimension_numbers<[1], [0], [0], [1], [0, 0, 1, 1], [], []>} : vector<8x8xbf16>, vector<8x32xbf16>, vector<8x32xf32> -> vector<8x32xf32>
      %c0_87 = arith.constant 0 : index
      %c1_88 = arith.constant 1 : index
      %141 = vector.load %arg14[%c0_87, %c1_88] : memref<8x4xf32, #tpu.memory_space<vmem>>, vector<8x1xf32>
      %142 = tpu.reciprocal %141 : vector<8x1xf32> -> vector<8x1xf32>
      %c1_89 = arith.constant 1 : index
      %c0_90 = arith.constant 0 : index
      %c0_91 = arith.constant 0 : index
      %143 = vector.load %arg12[%c1_89, %c0_90, %c0_91] : memref<4x8x8xf32, #tpu.memory_space<vmem>>, vector<1x8x8xf32>
      %144 = vector.shape_cast %143 : vector<1x8x8xf32> to vector<8x8xf32>
      %145 = vector.broadcast %142 : vector<8x1xf32> to vector<8x8xf32>
      %146 = arith.mulf %144, %145 : vector<8x8xf32>
      %147 = arith.truncf %146 : vector<8x8xf32> to vector<8x8xbf16>
      %c1_92 = arith.constant 1 : index
      %c0_93 = arith.constant 0 : index
      %c0_94 = arith.constant 0 : index
      %148 = vector.load %arg8[%c1_92, %c0_93, %c0_94] : memref<4x8x32xbf16, #tpu.memory_space<vmem>>, vector<1x8x32xbf16>
      %149 = vector.shape_cast %148 : vector<1x8x32xbf16> to vector<8x32xbf16>
      %cst_95 = arith.constant dense<0.000000e+00> : vector<8x32xf32>
      %150 = tpu.matmul %147, %149, %cst_95 {dimension_numbers = #tpu.dot_dimension_numbers<[1], [0], [0], [1], [0, 0, 1, 1], [], []>} : vector<8x8xbf16>, vector<8x32xbf16>, vector<8x32xf32> -> vector<8x32xf32>
      %151 = arith.addf %140, %150 : vector<8x32xf32>
      %c0_96 = arith.constant 0 : index
      %c2_97 = arith.constant 2 : index
      %152 = vector.load %arg14[%c0_96, %c2_97] : memref<8x4xf32, #tpu.memory_space<vmem>>, vector<8x1xf32>
      %153 = tpu.reciprocal %152 : vector<8x1xf32> -> vector<8x1xf32>
      %c2_98 = arith.constant 2 : index
      %c0_99 = arith.constant 0 : index
      %c0_100 = arith.constant 0 : index
      %154 = vector.load %arg12[%c2_98, %c0_99, %c0_100] : memref<4x8x8xf32, #tpu.memory_space<vmem>>, vector<1x8x8xf32>
      %155 = vector.shape_cast %154 : vector<1x8x8xf32> to vector<8x8xf32>
      %156 = vector.broadcast %153 : vector<8x1xf32> to vector<8x8xf32>
      %157 = arith.mulf %155, %156 : vector<8x8xf32>
      %158 = arith.truncf %157 : vector<8x8xf32> to vector<8x8xbf16>
      %c2_101 = arith.constant 2 : index
      %c0_102 = arith.constant 0 : index
      %c0_103 = arith.constant 0 : index
      %159 = vector.load %arg8[%c2_101, %c0_102, %c0_103] : memref<4x8x32xbf16, #tpu.memory_space<vmem>>, vector<1x8x32xbf16>
      %160 = vector.shape_cast %159 : vector<1x8x32xbf16> to vector<8x32xbf16>
      %cst_104 = arith.constant dense<0.000000e+00> : vector<8x32xf32>
      %161 = tpu.matmul %158, %160, %cst_104 {dimension_numbers = #tpu.dot_dimension_numbers<[1], [0], [0], [1], [0, 0, 1, 1], [], []>} : vector<8x8xbf16>, vector<8x32xbf16>, vector<8x32xf32> -> vector<8x32xf32>
      %162 = arith.addf %151, %161 : vector<8x32xf32>
      %c0_105 = arith.constant 0 : index
      %c3_106 = arith.constant 3 : index
      %163 = vector.load %arg14[%c0_105, %c3_106] : memref<8x4xf32, #tpu.memory_space<vmem>>, vector<8x1xf32>
      %164 = tpu.reciprocal %163 : vector<8x1xf32> -> vector<8x1xf32>
      %c3_107 = arith.constant 3 : index
      %c0_108 = arith.constant 0 : index
      %c0_109 = arith.constant 0 : index
      %165 = vector.load %arg12[%c3_107, %c0_108, %c0_109] : memref<4x8x8xf32, #tpu.memory_space<vmem>>, vector<1x8x8xf32>
      %166 = vector.shape_cast %165 : vector<1x8x8xf32> to vector<8x8xf32>
      %167 = vector.broadcast %164 : vector<8x1xf32> to vector<8x8xf32>
      %168 = arith.mulf %166, %167 : vector<8x8xf32>
      %169 = arith.truncf %168 : vector<8x8xf32> to vector<8x8xbf16>
      %c3_110 = arith.constant 3 : index
      %c0_111 = arith.constant 0 : index
      %c0_112 = arith.constant 0 : index
      %170 = vector.load %arg8[%c3_110, %c0_111, %c0_112] : memref<4x8x32xbf16, #tpu.memory_space<vmem>>, vector<1x8x32xbf16>
      %171 = vector.shape_cast %170 : vector<1x8x32xbf16> to vector<8x32xbf16>
      %cst_113 = arith.constant dense<0.000000e+00> : vector<8x32xf32>
      %172 = tpu.matmul %169, %171, %cst_113 {dimension_numbers = #tpu.dot_dimension_numbers<[1], [0], [0], [1], [0, 0, 1, 1], [], []>} : vector<8x8xbf16>, vector<8x32xbf16>, vector<8x32xf32> -> vector<8x32xf32>
      %173 = arith.addf %162, %172 : vector<8x32xf32>
      %c0_114 = arith.constant 0 : index
      %c0_115 = arith.constant 0 : index
      %174 = vector.load %arg9[%c0_114, %c0_115] : memref<1x32xf32, #tpu.memory_space<vmem>>, vector<1x32xf32>
      %175 = vector.broadcast %174 : vector<1x32xf32> to vector<8x32xf32>
      %176 = arith.addf %173, %175 : vector<8x32xf32>
      %177 = arith.truncf %176 : vector<8x32xf32> to vector<8x32xbf16>
      %c0_116 = arith.constant 0 : index
      %c0_117 = arith.constant 0 : index
      %c0_118 = arith.constant 0 : index
      %178 = vector.load %arg10[%c0_116, %c0_117, %c0_118] : memref<1x8x32xbf16, #tpu.memory_space<vmem>>, vector<1x8x32xbf16>
      %179 = vector.shape_cast %178 : vector<1x8x32xbf16> to vector<8x32xbf16>
      %180 = vector.shape_cast %177 : vector<8x32xbf16> to vector<1x8x32xbf16>
      tpu.vector_store %arg10[%c0_116, %c0_117, %c0_118], %180 {strides = array<i32>} : memref<1x8x32xbf16, #tpu.memory_space<vmem>>, vector<1x8x32xbf16>,
    } else {
    }
    return
  }
  func.func @transform_0(%arg0: i32, %arg1: i32, %arg2: i32) -> (i32, i32, i32) {
    %c0_i32 = arith.constant 0 : i32
    %c0_i32_0 = arith.constant 0 : i32
    return %arg0, %arg1, %c0_i32 : i32, i32, i32
  }
  func.func @transform_1(%arg0: i32, %arg1: i32, %arg2: i32) -> (i32, i32, i32) {
    %c0_i32 = arith.constant 0 : i32
    %c0_i32_0 = arith.constant 0 : i32
    return %arg0, %arg2, %c0_i32 : i32, i32, i32
  }
  func.func @transform_2(%arg0: i32, %arg1: i32, %arg2: i32) -> (i32, i32, i32) {
    %c0_i32 = arith.constant 0 : i32
    %c0_i32_0 = arith.constant 0 : i32
    return %arg0, %arg2, %c0_i32 : i32, i32, i32
  }
  func.func @transform_3(%arg0: i32, %arg1: i32, %arg2: i32) -> (i32, i32) {
    %c0_i32 = arith.constant 0 : i32
    %c0_i32_0 = arith.constant 0 : i32
    %c0_i32_1 = arith.constant 0 : i32
    return %c0_i32, %c0_i32_0 : i32, i32
  }
  func.func @transform_4(%arg0: i32, %arg1: i32, %arg2: i32) -> (i32, i32) {
    %c0_i32 = arith.constant 0 : i32
    %c0_i32_0 = arith.constant 0 : i32
    %c0_i32_1 = arith.constant 0 : i32
    return %c0_i32, %c0_i32_0 : i32, i32
  }
  func.func @transform_5(%arg0: i32, %arg1: i32, %arg2: i32) -> (i32, i32, i32) {
    %c0_i32 = arith.constant 0 : i32
    %c0_i32_0 = arith.constant 0 : i32
    %c0_i32_1 = arith.constant 0 : i32
    %c0_i32_2 = arith.constant 0 : i32
    return %c0_i32, %c0_i32_0, %c0_i32_1 : i32, i32, i32
  }
  func.func @transform_6(%arg0: i32, %arg1: i32, %arg2: i32) -> (i32, i32) {
    %c0_i32 = arith.constant 0 : i32
    %c0_i32_0 = arith.constant 0 : i32
    %c0_i32_1 = arith.constant 0 : i32
    return %c0_i32, %c0_i32_0 : i32, i32
  }
  func.func @transform_7(%arg0: i32, %arg1: i32, %arg2: i32) -> (i32, i32, i32) {
    %c0_i32 = arith.constant 0 : i32
    %c0_i32_0 = arith.constant 0 : i32
    return %arg0, %arg1, %c0_i32 : i32, i32, i32
  }
}

</mosaic_0001>

<bundles_post_ra>
// kernel: tpu_custom_call.1
= control target key start
LH: loop header
LB: loop body
LE: loop exit
PB: predicated region body
PF: predicated region fallthrough
CT: control target
= control target key end

     0   :  { %s1905_s0 = inlined_call_operand.hbm [shape: bf16[2,8,32], index: 0, kind: input, shape index: {}]   ;;  %s1906_s1 = inlined_call_operand.hbm [shape: bf16[2,8,32], index: 1, kind: input, shape index: {}]   ;;  %s1907_s2 = inlined_call_operand.hbm [shape: bf16[2,8,32], index: 2, kind: input, shape index: {}]   ;;  %s1908_s3 = inlined_call_operand.hbm [shape: bf16[32,32], index: 3, kind: input, shape index: {}]   ;;  %s1909_s4 = inlined_call_operand.vmem [shape: f32[1,32], index: 4, kind: input, shape index: {}]   ;;  %s1910_s5 = inlined_call_operand.hbm [shape: bf16[4,8,32], index: 5, kind: input, shape index: {}]   ;;  %s1911_s6 = inlined_call_operand.vmem [shape: f32[1,32], index: 6, kind: input, shape index: {}]   ;;  %s1912_s7 = inlined_call_operand.hbm [shape: bf16[2,8,32], index: 7, kind: output, shape index: {}]  }
   0x1   :  { %1925 = sst [smem:[#allocation28_spill]] %s1906_s1 }
   0x2   :  { %1926 = sst [smem:[#allocation29_spill]] %s1908_s3 }
   0x3   :  { %1927 = sst [smem:[#allocation30_spill]] %s1910_s5 }
   0x4   :  { %1928 = sst [smem:[#allocation31_spill]] %s1912_s7 }
   0x5   :  { %12 = vsyncpa [#allocation7], 0 }
   0x6   :  { %14 = vsyncpa [#allocation7 + $0x1], 0 }
   0x7   :  { %15 = vsyncpa [#allocation10], 0 }
   0x8   :  { %17 = vsyncpa [#allocation10 + $0x1], 0 }
   0x9   :  { %18 = vsyncpa [#allocation13], 0 }
   0xa   :  { %19 = vsyncpa [#allocation8], 0 }
   0xb   :  { %21 = vsyncpa [#allocation8 + $0x1], 0  ;;  %s1595_s24 = smov 0   ;;  %s1597_s25 = smov 0  }
   0xc   :  { %s1599_s26 = smov 0   ;;  %s1601_s27 = smov 0  }
   0xd   :  { %s1603_s28 = smov 0   ;;  %s1605_s29 = smov 0  }
   0xe LB: > { %1929 = sst [smem:[#allocation20_spill]] %s1520_s24  ;;  %s1626_s30 = sadd.s32 4294967295, %s1540_s29   ;;  %s1540_s29 = sphi %s1605_s29, %s27_s29   ;;  %s1536_s28 = sphi %s1603_s28, %s1958_s28   ;;  %s1532_s27 = sphi %s1601_s27, %s1957_s27   ;;  %s1528_s26 = sphi %s1599_s26, %s1956_s26   ;;  %s1524_s25 = sphi %s1597_s25, %s1960_s25   ;;  %s1520_s24 = sphi %s1595_s24, %s1959_s24  }
   0xf   : > { %1930 = sst [smem:[#allocation21_spill]] %s1528_s26  ;;  %p1121_p0 = scmp.ge.s32.totalorder %s1540_s29, 1 }
  0x10   : > { %1931 = sst [smem:[#allocation22_spill]] %s1536_s28  ;;  %p69_p1 = scmp.eq.s32.totalorder %s1626_s30, 0 }
  0x11   : > { %1932 = sst [smem:[#allocation23_spill]] %s1540_s29  ;;  %p247_p2 = scmp.lt.s32.totalorder %s1540_s29, 3 }
  0x12   : > { %s1933_s3 = sld [smem:[#allocation29_spill]]  ;;  %s1542_s12 = smov [#allocation12]  }
  0x13   : > { %p1634_p3 = pnand %p1121_p0, %p247_p2  ;;  %s260_s13 = sshll.u32 %s1542_s12, 4  ;;  %s261_s13 = int_to_ptr.vmem [resolvable:$true] %s260_s13 }
  0x14   : > { %s1913_s15 = smov 64   ;;  %s1914_s16 = smov 4  }
  0x15   : > { %p1181_p4 = pneg %p1634_p3  ;;  %s1120_s17 = sadd.s32 4294967294, %s1540_s29  }
  0x16   : > { %s46_s18 = sadd.s32 1, %s1536_s28  ;;  %s55_s19 = sadd.s32 1, %s1528_s26 }
  0x17   : > { %p1642_p5 = pnand %p1181_p4, %p69_p1  ;;  %p48_p7 = scmp.ge.s32.totalorder %s46_s18, 2 }
  0x18   : > { %s258_s10 = sshll.u32 %s1933_s3, 4  ;;  %p62_p8 = scmp.ne.s32.totalorder %s1528_s26, %s1524_s25  ;;  %s259_s10 = int_to_ptr.hbm [resolvable:$true] %s258_s10 }
  0x19   : > { %1184 = dma.hbm_to_vmem [thread:$0]  (!%p1642_p5), %s259_s10, 256, %s261_s13, [#allocation13], %s1913_s15, %s1913_s15, %s1914_s16  }
  0x1a   : > { %p63_p9 = scmp.eq.s32.totalorder %s1540_s29, 0  ;;  %p68_p10 = scmp.ne.s32.totalorder %s1524_s25, %s1520_s24 }
  0x1b   : > { %s1962_s18 = smov (%p48_p7, %s46_s18), 0  ;;  %p234_p13 = scmp.eq.s32.totalorder %s1626_s30, 1 }
  0x1c   : > { %1936 = sst [smem:[#allocation24_spill]] %s1962_s18  ;;  %p1662_p11 = por %p63_p9, %p62_p8 }
  0x1d   : > { %p1668_p12 = por %p69_p1, %p68_p10  ;;  %s50_s22 = ssub.s32 %s1536_s28, %s1962_s18 }
  0x1e   : > { %p53_p0 = scmp.eq.s32.totalorder %s50_s22, 0  ;;  %p240_p2 = scmp.eq.s32.totalorder %s1120_s17, 1 }
  0x1f   : > { %p1675_p4 = por %p234_p13, %p62_p8  ;;  %p1204_p7 = scmp.lt.s32.totalorder %s1540_s29, 2 }
  0x20   : > { %s1681_s8 = scalar_select %p53_p0, %s1528_s26, %s55_s19  }
  0x21   : > { %s1939_s23 = scalar_select %p1675_p4, 1, 0 }
  0x22   : > { %1941 = sst [smem:[#allocation26_spill]] %s1681_s8  ;;  %p1683_p9 = por %p240_p2, %p68_p10 }
  0x23   : > { %1940 = sst [smem:[#allocation25_spill]] %s1939_s23  ;;  %s294_s10 = sand.u32 1, %s1528_s26  }
  0x24   : > { %s1942_s9 = scalar_select %p1683_p9, 1, 0 }
  0x25   : > { %s1688_s12 = sshll.u32 %s294_s10, 2  ;;  %s1126_s13 = sshll.u32 %s1536_s28, 2 }
  0x26   : > { %1943 = sst [smem:[#allocation27_spill]] %s1942_s9  ;;  %p1693_p6 = pnand %p1204_p7, %p1662_p11 }
  0x27   : > { %s314_s22 = sand.u32 1, %s1540_s29   ;;  %s1945_s1 = sld [smem:[#allocation28_spill]] }
  0x28   : > { %s318_s18 = scalar_lea.vmem [#allocation9], %s1688_s12  ;;  %s315_s28 = scalar_lea.sflag [#allocation10], %s314_s22 }
  0x29   : > { %s327_s8 = sshll.u32 %s318_s18, 4  ;;  %s1946_s5 = sld [smem:[#allocation30_spill]]  ;;  %s328_s8 = int_to_ptr.vmem [resolvable:$true] %s327_s8 }
  0x2a   : > { %s1545_s29 = smov [#allocation14]   ;;  %s1947_s15 = smov 4  }
  0x2b   : > { %s277_s24 = sshll.u32 %s1545_s29, 4  ;;  %s303_s22 = scalar_lea.hbm %s1905_s0, %s1126_s13  ;;  %s278_s24 = int_to_ptr.vmem [resolvable:$true] %s277_s24 }
  0x2c   : > { %s295_s26 = scalar_lea.sflag [#allocation7], %s294_s10  ;;  %s343_s14 = scalar_lea.hbm %s1907_s2, %s1126_s13 }
  0x2d   : > { %s323_s16 = scalar_lea.hbm %s1945_s1, %s1126_s13  ;;  %s338_s23 = scalar_lea.vmem [#allocation11], %s1688_s12 }
  0x2e   : > { %s325_s3 = sshll.u32 %s323_s16, 4  ;;  %s1948_s16 = smov 64   ;;  %s326_s3 = int_to_ptr.hbm [resolvable:$true] %s325_s3 }
  0x2f   : > { %1194 = dma.hbm_to_vmem [thread:$0]  (!%p1693_p6), %s326_s3, 64, %s328_s8, %s315_s28  }
  0x30   : > { %s275_s9 = sshll.u32 %s1946_s5, 4  ;;  %s305_s3 = sshll.u32 %s303_s22, 4  ;;  %s276_s9 = int_to_ptr.hbm [resolvable:$true] %s275_s9  ;;  %s306_s3 = int_to_ptr.hbm [resolvable:$true] %s305_s3 }
  0x31   : > { %1187 = dma.hbm_to_vmem [thread:$0]  (!%p1642_p5), %s276_s9, 256, %s278_s24, [#allocation13], %s1948_s16, %s1948_s16, %s1947_s15  }
  0x32   : > { %s298_s8 = scalar_lea.vmem [#allocation6], %s1688_s12  ;;  %s345_s5 = sshll.u32 %s343_s14, 4  ;;  %s346_s5 = int_to_ptr.hbm [resolvable:$true] %s345_s5 }
  0x33   : > { %s307_s1 = sshll.u32 %s298_s8, 4  ;;  %s347_s7 = sshll.u32 %s338_s23, 4  ;;  %s308_s1 = int_to_ptr.vmem [resolvable:$true] %s307_s1  ;;  %s348_s7 = int_to_ptr.vmem [resolvable:$true] %s347_s7 }
  0x34   : > { %1191 = dma.hbm_to_vmem [thread:$0]  (!%p1693_p6), %s306_s3, 64, %s308_s1, %s295_s26  }
  0x35   : > { %1197 = dma.hbm_to_vmem [thread:$0]  (!%p1693_p6), %s346_s5, 64, %s348_s7, %s315_s28  }
  0x36   : > { %356 = sbr.rel (%p1634_p3) target bundleno = 1138 (0x472), region = 48  ;;  %s1727_s24 = sand.u32 (!%p1634_p3), 1, %s1524_s25  }
  0x37   : > { %s1730_s1 = sshll.u32 (!%p1634_p3), %s1727_s24, 2  ;;  %s359_s9 = scalar_lea.sflag (!%p1634_p3), [#allocation7], %s1727_s24 }
  0x38   : > { %s362_s10 = scalar_lea.vmem (!%p1634_p3), [#allocation6], %s1730_s1 }
  0x3b   : > { %1503 = dma.done.wait (%p1668_p12), %s359_s9, 64  }
  0x3c   : > { %1505 = vsyncadd (%p1668_p12), %s359_s9, 4294967232  ;;  %s368_s5 = sand.u32 1, %s1626_s30   ;;  %s372_s28 = scalar_lea.vmem [#allocation9], %s1730_s1 }
  0x3d   : > { %s369_s7 = scalar_lea.sflag [#allocation10], %s368_s5 }
  0x3e   : > { %1507 = dma.done.wait (%p1668_p12), %s369_s7, 128  }
  0x3f   : > { %1509 = vsyncadd (%p1668_p12), %s369_s7, 4294967168  ;;  %s382_s11 = scalar_lea.vmem [#allocation11], %s1730_s1 }
  0x40   : > { %1511 = dma.done.wait (%p69_p1), [#allocation13], 512  }
  0x41   : > { %1513 = vsyncadd (%p69_p1), [#allocation13], 4294966784  ;;  %v1164_v0 = vld [vmem:[#allocation12 + $0x8] sm:$0xff]  ;;  %v489_v1 = vld [vmem:[%s372_s28] sm:$0xf]  ;;  %vm468_vm0 = vcmask 261120  }
  0x42   : > { %478 = vmatpush.bf16.msra.mxu0 %v1164_v0  ;;  %v1163_v2 = vld [vmem:[#allocation12] sm:$0xff]  ;;  %v572_v3 = vunpack.c.l.b16 %v489_v1  ;;  %v447_v5 = vld [vmem:[%s362_s10] sm:$0xf]  ;;  %s1546_s23 = smov 112   ;;  %s1547_s21 = smov 120   ;;  %vm442_vm1 = vcmask 64512  }
  0x43   : > { %s1548_s12 = smov 104   ;;  %v496_v6 = vsel %vm442_vm1, %v489_v1, 0  ;;  %v1280_v9 = vld [vmem:[%s1909_s4] ss:$0 sm:$0xff]  ;;  %vm486_vm2 = vcmask 257024   ;;  %vm439_vm3 = vcmask 31744  }
  0x44   : > { %v573_v4 = vpack.c.b16 %v572_v3, %v572_v3  ;;  %505 = vmatpush.bf16.xpose.msra.mxu1 %v496_v6  ;;  %v1549_v27 = vmov -inf   ;;  %v1550_v28 = vmov 0   ;;  %v1551_v29 = vmov 0.0   ;;  %v490_v43 = vld [vmem:[%s382_s11] sm:$0xf]  ;;  %s1160_s17 = sshll.u32 %s1532_s27, 2 }
  0x45   : > { %440 = vst.msk [vmem:[#allocation4] sm:$0xff] %vm439_vm3, %v1549_v27  ;;  %1269 = vset.pattern.permute.xlu0 %v1550_v28  ;;  %vm533_vm4 = vcmask 7168   ;;  %vm540_vm5 = vcmask 1043456   ;;  %v622_v44 = vunpack.c.l.b16 %v490_v43  ;;  %v1552_v45 = vmov 1   ;;  %s1949_s22 = sld [smem:[#allocation31_spill]]  ;;  %s433_s26 = scalar_lea.vmem [#allocation15], %s1730_s1 }
  0x46   : > { %479 = vmatpush.bf16.msra.mxu0 %v1163_v2  ;;  %657 = vrot.lane.b32.xlu1 %v573_v4, %s1546_s23  ;;  %441 = vst.msk [vmem:[#allocation5] sm:$0xff] %vm439_vm3, %v1551_v29  ;;  %v542_v46 = vsel %vm540_vm5, %v490_v43, 0  ;;  %v1553_v48 = vmov 2   ;;  %vm617_vm6 = vcmask 15368   ;;  %vm700_vm7 = vcmask 23568   ;;  %s969_s29 = sshll.u32 %s433_s26, 4  ;;  %s970_s29 = int_to_ptr.vmem [resolvable:$true] %s969_s29 }
  0x47   : > { %574 = vrot.lane.b32.xlu0 %v573_v4, %s1547_s21  ;;  %446 = vst.msk [vmem:[#allocation3 + $0x18] sm:$0xff] %vm442_vm1, %v1551_v29  ;;  %1270 = vset.pattern.permute.xlu1 %v1552_v45  ;;  %v623_v47 = vpack.c.b16 %v622_v44, %v622_v44  ;;  %v1554_v62 = vmov 3   ;;  %vm780_vm8 = vcmask 31768   ;;  %s956_s27 = scalar_lea.sflag [#allocation8], %s1727_s24 }
  0x48   : > { %443 = vst.msk [vmem:[#allocation3] sm:$0xff] %vm442_vm1, %v1551_v29  ;;  %551 = vmatpush.bf16.msra.mxu2 %v542_v46  ;;  %1272 = vset.pattern.permute.xlu2 %v1553_v48 }
  0x49   : > { %1146 = vmatmul.msk.bf16.vlgmr.msra.gmra.mxu0 %vm468_vm0, %v447_v5  ;;  %444 = vst.msk [vmem:[#allocation3 + $0x8] sm:$0xff] %vm442_vm1, %v1551_v29 }
  0x4a   : > { %445 = vst.msk [vmem:[#allocation3 + $0x10] sm:$0xff] %vm442_vm1, %v1551_v29 }
  0x4b   : > { %s967_s3 = scalar_lea.hbm %s1949_s22, %s1160_s17  ;;  %s1470_s1 = scalar_lea.hbm %s1949_s22, 8 }
  0x4c   : > { %v1777_v33 = vld [vmem:[#allocation4] sm:$0xff]  ;;  %s971_s20 = sshll.u32 %s967_s3, 4  ;;  %s972_s20 = int_to_ptr.hbm [resolvable:$true] %s971_s20 }
  0x4d   : > { %s1464_s14 = sshra.s32 %s972_s20, 4  ;;  %s1465_s14 = int_to_ptr.hbm [resolvable:$true] %s1464_s14 }
  0x4e   : > { %737 = vrot.lane.b32.xlu1 %v573_v4, %s1548_s12  ;;  %s1466_s9 = scalar_lea.hbm %s1465_s14, 4  ;;  %p1471_p6 = scmp.lt.s32.totalorder %s1465_s14, %s1949_s22 }
  0x4f   : > { %p1467_p1 = scmp.ne.s32.totalorder %s1465_s14, %s1466_s9  ;;  %p1472_p8 = scmp.lt.s32.totalorder %s1470_s1, %s1466_s9 }
  0x51   : > { %p1468_p3 = pnand %p1467_p1, %p1675_p4  ;;  %p1473_p10 = por %p1472_p8, %p1471_p6 }
  0x53   : > { %p1469_p5 = pneg %p1468_p3 }
  0x55   : > { %p1474_p11 = pnand %p1473_p10, %p1469_p5 }
  0xb8   : > { %v658_v7 = vpop.permute.xlu1 %657 }
  0xb9   : > { %v663_v8 = vsel %vm442_vm1, %v658_v7, 0  ;;  %v575_v17 = vpop.permute.xlu0 %574 }
  0xba   : > { %672 = vmatpush.bf16.xpose.msrb.mxu0 %v663_v8  ;;  %v580_v18 = vsel %vm442_vm1, %v575_v17, 0 }
  0xbb   : > { %589 = vmatpush.bf16.xpose.msra.mxu3 %v580_v18 }
  0xc0   : > { %v738_v19 = vpop.permute.xlu1 %737 }
  0xc1   : > { %v743_v20 = vsel %vm442_vm1, %v738_v19, 0 }
  0xc3   : > { %752 = vmatpush.bf16.xpose.msrb.mxu3 %v743_v20 }
  0xc6   : > { %v481_v10 = vpop.f32.mrf.mxu0 }
  0xc7   : > { %v482_v11 = vadd.f32 %v1280_v9, %v481_v10 }
  0xc9   : > { %v485_v12 = vpack.c.bf16 %v482_v11, %v482_v11 }
  0xcb   : > { %487 = vst.msk [vmem:[#allocation2] sm:$0xf] %vm486_vm2, %v485_v12 }
  0xce   : > { %v483_v13 = vpop.f32.mrf.mxu0 }
  0xd2   : > { %v488_v14 = vld [vmem:[#allocation2] sm:$0xf] }
  0xd3   : > { %1147 = vmatmul.msk.bf16.vlgmr.msra.gmra.mxu1 %vm442_vm1, %v488_v14  ;;  %v567_v15 = vunpack.c.l.b16 %v488_v14 }
  0xd5   : > { %v568_v16 = vpack.c.b16 %v567_v15, %v567_v15 }
  0xd7   : > { %655 = vrot.lane.b32.xlu2 %v568_v16, %s1546_s23  ;;  %569 = vrot.lane.b32.xlu0 %v568_v16, %s1547_s21 }
  0xdf   : > { %735 = vrot.lane.b32.xlu2 %v568_v16, %s1548_s12  ;;  %v512_v16 = vld [vmem:[#allocation5] sm:$0xff] }
 0x131   : > { %v656_v21 = vpop.permute.xlu2 %655 }
 0x132   : > { %1151 = vmatmul.msk.bf16.vlgmr.msrb.gmra.mxu0 %vm442_vm1, %v656_v21 }
 0x139   : > { %v736_v26 = vpop.permute.xlu2 %735 }
 0x149   : > { %v570_v22 = vpop.permute.xlu0 %569 }
 0x14a   : > { %1149 = vmatmul.msk.bf16.vlgmr.msra.gmra.mxu3 %vm442_vm1, %v570_v22 }
 0x150   : > { %v507_v23 = vpop.f32.mrf.mxu1 }
 0x151   : > { %v513_v24 = vsel %vm442_vm1, %v507_v23, -inf }
 0x152   : > { %514 = vmax.xlane.f32.xlu0 %v513_v24 }
 0x158   : > { %v509_v25 = vpop.f32.mrf.mxu1 }
 0x15a   : > { %1153 = vmatmul.msk.bf16.vlgmr.msrb.gmra.mxu3 %vm442_vm1, %v736_v26 }
 0x1af   : > { %v1772_v30 = vpop.f32.mrf.mxu0 }
 0x1b0   : > { %v680_v31 = vsel %vm442_vm1, %v1772_v30, -inf }
 0x1b1   : > { %681 = vmax.xlane.f32.xlu2 %v680_v31 }
 0x1b7   : > { %v676_v32 = vpop.f32.mrf.mxu0 }
 0x1c5   : > { %v515_v34 = vpop.xlane.xlu0 %514 }
 0x1c6   : > { %v1780_v35 = vmax.f32 %v1777_v33, %v515_v34 }
 0x1c8   : > { %v517_v36 = vsub.f32 %v1777_v33, %v1780_v35  ;;  %535 = vst.msk [vmem:[#allocation4] sm:$0xff] %vm533_vm4, %v1780_v35  ;;  %522 = vperm.xlu0 %1269, %v1780_v35  }
 0x1ca   : > { %v518_v8 = vmul.f32 1.442695, %v517_v36 }
 0x1cd   : > { %v1787_v37 = vpop.f32.mrf.mxu3 }
 0x1ce   : > { %v597_v38 = vsel %vm442_vm1, %v1787_v37, -inf }
 0x1cf   : > { %598 = vmax.xlane.f32.xlu1 %v597_v38  ;;  %v1801_v53 = vld [vmem:[#allocation4] sm:$0xff] }
 0x1d5   : > { %v593_v39 = vpop.f32.mrf.mxu3 }
 0x1dd   : > { %v1791_v40 = vpop.f32.mrf.mxu3 }
 0x1de   : > { %v760_v41 = vsel %vm442_vm1, %v1791_v40, -inf }
 0x1df   : > { %761 = vmax.xlane.f32.xlu2 %v760_v41 }
 0x1e5   : > { %v756_v42 = vpop.f32.mrf.mxu3 }
 0x1f7   : > { %624 = vrot.lane.b32.xlu2 %v623_v47, %s1547_s21 }
 0x224   : > { %v682_v59 = vpop.xlane.xlu2 %681 }
 0x23a   : > { %v523_v49 = vpop.permute.xlu0 %522 }
 0x23b   : > { %v525_v50 = vsub.f32 %v507_v23, %v523_v49 }
 0x23d   : > { %v526_v51 = vmul.f32 1.442695, %v525_v50 }
 0x23f   : > { %1282 = vpow2.f32 %v526_v51 }
 0x242   : > { %v599_v52 = vpop.xlane.xlu1 %598 }
 0x243   : > { %v1804_v54 = vmax.f32 %v1801_v53, %v599_v52 }
 0x245   : > { %v1283_v55 = vpop.eup %1282  ;;  %v601_v56 = vsub.f32 %v1801_v53, %v1804_v54  ;;  %619 = vst.msk [vmem:[#allocation4] sm:$0xff] %vm617_vm6, %v1804_v54  ;;  %606 = vperm.xlu1 %1270, %v1804_v54  }
 0x246   : > { %v529_v57 = vsel %vm442_vm1, %v1283_v55, 0.0  ;;  %v536_v58 = vpack.c.bf16 %v1283_v55, %v1283_v55 }
 0x247   : > { %530 = vadd.xlane.f32.xlu0 %v529_v57  ;;  %v726_v57 = vld [vmem:[#allocation3 + $0x10] sm:$0xff] }
 0x248   : > { %1148 = vmatmul.msk.bf16.vlgmr.msra.gmra.mxu2 %vm442_vm1, %v536_v58 }
 0x24c   : > { %v678_v60 = vld [vmem:[#allocation4] sm:$0xff] }
 0x24d   : > { %v683_v61 = vmax.f32 %v678_v60, %v682_v59  ;;  %1271 = vset.pattern.permute.xlu1 %v1554_v62 }
 0x24f   : > { %689 = vperm.xlu2 %1272, %v683_v61   ;;  %v684_v63 = vsub.f32 %v678_v60, %v683_v61  ;;  %702 = vst.msk [vmem:[#allocation4] sm:$0xff] %vm700_vm7, %v683_v61 }
 0x251   : > { %v685_v33 = vmul.f32 1.442695, %v684_v63 }
 0x252   : > { %v762_v0 = vpop.xlane.xlu2 %761 }
 0x256   : > { %v758_v1 = vld [vmem:[#allocation4] sm:$0xff] }
 0x257   : > { %v763_v2 = vmax.f32 %v758_v1, %v762_v0  ;;  %704 = vrot.lane.b32.xlu2 %v623_v47, %s1546_s23  ;;  %v646_v0 = vld [vmem:[#allocation3 + $0x8] sm:$0xff] }
 0x258   : > { %1274 = vset.pattern.permute.xlu2 %v1554_v62 }
 0x259   : > { %v764_v3 = vsub.f32 %v758_v1, %v763_v2  ;;  %782 = vst.msk [vmem:[#allocation4] sm:$0xff] %vm780_vm8, %v763_v2  ;;  %769 = vperm.xlu1 %1271, %v763_v2   ;;  %v806_v1 = vld [vmem:[#allocation3 + $0x18] sm:$0xff] }
 0x25a   : > { %v625_v4 = vpop.permute.xlu2 %624 }
 0x25b   : > { %v630_v5 = vsel %vm540_vm5, %v625_v4, 0  ;;  %v765_v24 = vmul.f32 1.442695, %v764_v3 }
 0x25c   : > { %639 = vmatpush.bf16.msrb.mxu2 %v630_v5 }
 0x261   : > { %784 = vrot.lane.b32.xlu1 %v623_v47, %s1548_s12 }
 0x262   : > { %1273 = vset.pattern.permute.xlu1 %v1553_v48 }
 0x2a9   : > { %v690_v6 = vpop.permute.xlu2 %689 }
 0x2aa   : > { %v692_v7 = vsub.f32 %v1772_v30, %v690_v6 }
 0x2ac   : > { %v693_v9 = vmul.f32 1.442695, %v692_v7 }
 0x2ae   : > { %1284 = vpow2.f32 %v693_v9  ;;  %v557_v9 = vld [vmem:[#allocation3] sm:$0xff] }
 0x2af   : > { %1286 = vpow2.f32 %v518_v8 }
 0x2b1   : > { %v705_v10 = vpop.permute.xlu2 %704 }
 0x2b2   : > { %v710_v11 = vsel %vm540_vm5, %v705_v10, 0 }
 0x2b3   : > { %719 = vmatpush.bf16.msrb.mxu1 %v710_v11 }
 0x2b4   : > { %v1285_v12 = vpop.eup %1284 }
 0x2b5   : > { %v696_v13 = vsel %vm442_vm1, %v1285_v12, 0.0  ;;  %v703_v14 = vpack.c.bf16 %v1285_v12, %v1285_v12  ;;  %v1287_v15 = vpop.eup %1286 }
 0x2b6   : > { %697 = vadd.xlane.f32.xlu2 %v696_v13  ;;  %v528_v19 = vmul.f32 %v1287_v15, %v512_v16 }
 0x2b7   : > { %v607_v17 = vpop.permute.xlu1 %606  ;;  %1152 = vmatmul.msk.bf16.vlgmr.msrb.gmra.mxu1 %vm442_vm1, %v703_v14 }
 0x2b8   : > { %v609_v18 = vsub.f32 %v1787_v37, %v607_v17 }
 0x2ba   : > { %v610_v20 = vmul.f32 1.442695, %v609_v18  ;;  %v531_v21 = vpop.xlane.xlu0 %530 }
 0x2bb   : > { %v532_v22 = vadd.f32 %v531_v21, %v528_v19 }
 0x2bc   : > { %1288 = vpow2.f32 %v610_v20 }
 0x2bd   : > { %534 = vst.msk [vmem:[#allocation5] sm:$0xff] %vm533_vm4, %v532_v22  ;;  %1290 = vpow2.f32 %v765_v24 }
 0x2c2   : > { %v1289_v23 = vpop.eup %1288 }
 0x2c3   : > { %v613_v25 = vsel %vm442_vm1, %v1289_v23, 0.0  ;;  %v620_v26 = vpack.c.bf16 %v1289_v23, %v1289_v23  ;;  %v1291_v31 = vpop.eup %1290 }
 0x2c4   : > { %614 = vadd.xlane.f32.xlu1 %v613_v25  ;;  %v596_v43 = vld [vmem:[#allocation5] sm:$0xff]  ;;  %v926_v25 = vld [vmem:[#allocation14 + $0xc] sm:$0xf] }
 0x2c5   : > { %1150 = vmatmul.msk.bf16.vlgmr.msrb.gmra.mxu2 %vm442_vm1, %v620_v26  ;;  %v931_v26 = vsel %vm540_vm5, %v926_v25, 0 }
 0x2cb   : > { %v1832_v27 = vpop.f32.mrf.mxu2  ;;  %v770_v29 = vpop.permute.xlu1 %769 }
 0x2cc   : > { %v772_v30 = vsub.f32 %v1791_v40, %v770_v29  ;;  %v602_v40 = vmul.f32 1.442695, %v601_v56 }
 0x2ce   : > { %v773_v32 = vmul.f32 1.442695, %v772_v30  ;;  %809 = vperm.xlu2 %1274, %v1291_v31   ;;  %v897_v30 = vld [vmem:[#allocation14 + $0x8] sm:$0xf] }
 0x2d0   : > { %1292 = vpow2.f32 %v773_v32  ;;  %v841_v32 = vld [vmem:[#allocation14] sm:$0xf] }
 0x2d1   : > { %1294 = vpow2.f32 %v685_v33  ;;  %v874_v33 = vsel %vm540_vm5, %v841_v32, 0 }
 0x2d2   : > { %1296 = vpow2.f32 %v602_v40  ;;  %883 = vmatpush.bf16.msra.mxu1 %v874_v33 }
 0x2d3   : > { %v555_v34 = vpop.f32.mrf.mxu2  ;;  %v785_v35 = vpop.permute.xlu1 %784 }
 0x2d4   : > { %v790_v36 = vsel %vm540_vm5, %v785_v35, 0 }
 0x2d5   : > { %799 = vmatpush.bf16.msra.mxu2 %v790_v36 }
 0x2d6   : > { %v1293_v37 = vpop.eup %1292 }
 0x2d7   : > { %v783_v38 = vpack.c.bf16 %v1293_v37, %v1293_v37  ;;  %v776_v39 = vsel %vm442_vm1, %v1293_v37, 0.0  ;;  %v1295_v41 = vpop.eup %1294 }
 0x2d8   : > { %777 = vadd.xlane.f32.xlu0 %v776_v39  ;;  %v1297_v42 = vpop.eup %1296 }
 0x2d9   : > { %1154 = vmatmul.msk.bf16.vlgmr.msra.gmra.mxu2 %vm442_vm1, %v783_v38  ;;  %v612_v46 = vmul.f32 %v1297_v42, %v596_v43 }
 0x2da   : > { %940 = vmatpush.bf16.msrb.mxu2 %v931_v26 }
 0x2dd   : > { %729 = vperm.xlu1 %1273, %v1295_v41  }
 0x2e5   : > { %1275 = vset.pattern.permute.xlu1 %v1552_v45 }
 0x2e6   : > { %649 = vperm.xlu1 %1275, %v1297_v42  }
 0x2ec   : > { %560 = vperm.xlu0 %1269, %v1287_v15  }
 0x2ee   : > { %1277 = vset.pattern.permute.xlu1 %v1550_v28 }
 0x2f4   : > { %1276 = vset.pattern.permute.xlu0 %v1553_v48 }
 0x329   : > { %v698_v53 = vpop.xlane.xlu2 %697 }
 0x331   : > { %v810_v2 = vpop.permute.xlu2 %809 }
 0x332   : > { %v812_v6 = vmul.f32 %v810_v2, %v806_v1 }
 0x334   : > { %v721_v44 = vpop.f32.mrf.mxu1 }
 0x337   : > { %v615_v47 = vpop.xlane.xlu1 %614 }
 0x338   : > { %v616_v49 = vadd.f32 %v615_v47, %v612_v46 }
 0x33a   : > { %618 = vst.msk [vmem:[#allocation5] sm:$0xff] %vm617_vm6, %v616_v49 }
 0x33c   : > { %v723_v50 = vpop.f32.mrf.mxu1 }
 0x341   : > { %v679_v51 = vld [vmem:[#allocation5] sm:$0xff] }
 0x342   : > { %v695_v52 = vmul.f32 %v1295_v41, %v679_v51 }
 0x344   : > { %v699_v54 = vadd.f32 %v698_v53, %v695_v52 }
 0x346   : > { %701 = vst.msk [vmem:[#allocation5] sm:$0xff] %vm700_vm7, %v699_v54 }
 0x348   : > { %v641_v55 = vpop.f32.mrf.mxu2 }
 0x34b   : > { %v778_v58 = vpop.xlane.xlu0 %777 }
 0x34d   : > { %v759_v56 = vld [vmem:[#allocation5] sm:$0xff] }
 0x34e   : > { %v775_v28 = vmul.f32 %v1291_v31, %v759_v56  ;;  %v902_v31 = vsel %vm540_vm5, %v897_v30, 0 }
 0x34f   : > { %v730_v48 = vpop.permute.xlu1 %729  ;;  %911 = vmatpush.bf16.msra.mxu3 %v902_v31 }
 0x350   : > { %v779_v59 = vadd.f32 %v778_v58, %v775_v28  ;;  %v732_v60 = vmul.f32 %v730_v48, %v726_v57  ;;  %v643_v61 = vpop.f32.mrf.mxu2  ;;  %v1281_v28 = vld [vmem:[%s1911_s6] ss:$0 sm:$0xff] }
 0x352   : > { %781 = vst.msk [vmem:[#allocation5] sm:$0xff] %vm780_vm8, %v779_v59  ;;  %v733_v63 = vadd.f32 %v732_v60, %v721_v44 }
 0x354   : > { %734 = vst.msk [vmem:[#allocation3 + $0x10] sm:$0xff] %vm442_vm1, %v733_v63 }
 0x358   : > { %v650_v3 = vpop.permute.xlu1 %649 }
 0x359   : > { %v652_v4 = vmul.f32 %v650_v3, %v646_v0  ;;  %v818_v5 = vld [vmem:[#allocation5] sm:$0xff] }
 0x35a   : > { %1298 = vrcp.f32 %v818_v5  ;;  %v830_v18 = vand.u32 2147483648, %v818_v5  ;;  %v828_v20 = vand.u32 2147483647, %v818_v5  ;;  %vm824_vm10 = vweird.f32 %v818_v5 }
 0x35b   : > { %v653_v7 = vadd.f32 %v652_v4, %v641_v55  ;;  %v889_v43 = vld [vmem:[#allocation3 + $0x10] sm:$0xff] }
 0x35c   : > { %v801_v8 = vpop.f32.mrf.mxu2  ;;  %v831_v22 = vor.u32 1.1754944e-38, %v830_v18  ;;  %vm829_vm12 = vcmp.eq.f32.partialorder %v828_v20, 8.507059e+37 }
 0x35d   : > { %654 = vst.msk [vmem:[#allocation3 + $0x8] sm:$0xff] %vm442_vm1, %v653_v7  ;;  %v813_v10 = vadd.f32 %v812_v6, %v801_v8 }
 0x35e   : > { %v561_v11 = vpop.permute.xlu0 %560 }
 0x35f   : > { %814 = vst.msk [vmem:[#allocation3 + $0x18] sm:$0xff] %vm442_vm1, %v813_v10  ;;  %v563_v12 = vmul.f32 %v561_v11, %v557_v9 }
 0x360   : > { %v1299_v13 = vpop.eup %1298 }
 0x361   : > { %v564_v14 = vadd.f32 %v563_v12, %v1832_v27  ;;  %v820_v15 = vmul.f32 %v1299_v13, %v818_v5  ;;  %vm825_vm9 = vweird.f32 %v1299_v13  ;;  %v850_v27 = vld [vmem:[#allocation14 + $0x4] sm:$0xf] }
 0x362   : > { %vm826_vm11 = vmor %vm824_vm10, %vm825_vm9  ;;  %v855_v29 = vsel %vm540_vm5, %v850_v27, 0 }
 0x363   : > { %565 = vst.msk [vmem:[#allocation3] sm:$0xff] %vm442_vm1, %v564_v14  ;;  %v821_v16 = vsub.f32 1.0, %v820_v15  ;;  %864 = vmatpush.bf16.msra.mxu0 %v855_v29 }
 0x364   : > { %v803_v17 = vpop.f32.mrf.mxu2  ;;  %v842_v36 = vld [vmem:[#allocation3 + $0x8] sm:$0xff] }
 0x365   : > { %v822_v19 = vmul.f32 %v1299_v13, %v821_v16 }
 0x367   : > { %v823_v21 = vadd.f32 %v1299_v13, %v822_v19 }
 0x369   : > { %v827_v23 = vsel %vm826_vm11, %v1299_v13, %v823_v21 }
 0x36a   : > { %v832_v24 = vsel %vm829_vm12, %v831_v22, %v827_v23  ;;  %v833_v40 = vld [vmem:[#allocation3] sm:$0xff] }
 0x36b   : > { %836 = vperm.xlu1 %1277, %v832_v24   ;;  %920 = vperm.xlu2 %1274, %v832_v24  }
 0x36c   : > { %891 = vperm.xlu0 %1276, %v832_v24  }
 0x373   : > { %1278 = vset.pattern.permute.xlu2 %v1552_v45  ;;  %v918_v45 = vld [vmem:[#allocation3 + $0x18] sm:$0xff] }
 0x374   : > { %844 = vperm.xlu2 %1278, %v832_v24   ;;  %1279 = vset.pattern.permute.xlu0 %v1554_v62 }
 0x3c5   : > { %v921_v34 = vpop.permute.xlu2 %920 }
 0x3c6   : > { %v923_v35 = vmul.f32 %v921_v34, %v918_v45 }
 0x3c8   : > { %v924_v62 = vpack.c.bf16 %v923_v35, %v923_v35 }
 0x3ca   : > { %1158 = vmatmul.msk.bf16.vlgmr.msrb.gmra.mxu2 %vm442_vm1, %v924_v62 }
 0x3ce   : > { %v845_v37 = vpop.permute.xlu2 %844 }
 0x3cf   : > { %v847_v38 = vmul.f32 %v845_v37, %v842_v36 }
 0x3d1   : > { %v848_v39 = vpack.c.bf16 %v847_v38, %v847_v38 }
 0x3d3   : > { %1155 = vmatmul.msk.bf16.vlgmr.msra.gmra.mxu0 %vm442_vm1, %v848_v39 }
 0x3dd   : > { %v837_v41 = vpop.permute.xlu1 %836 }
 0x3de   : > { %v839_v42 = vmul.f32 %v837_v41, %v833_v40  ;;  %v892_v44 = vpop.permute.xlu0 %891 }
 0x3df   : > { %v894_v46 = vmul.f32 %v892_v44, %v889_v43 }
 0x3e0   : > { %v840_v47 = vpack.c.bf16 %v839_v42, %v839_v42 }
 0x3e1   : > { %v895_v49 = vpack.c.bf16 %v894_v46, %v894_v46 }
 0x3e2   : > { %1156 = vmatmul.msk.bf16.vlgmr.msra.gmra.mxu1 %vm442_vm1, %v840_v47 }
 0x3e3   : > { %1157 = vmatmul.msk.bf16.vlgmr.msra.gmra.mxu3 %vm442_vm1, %v895_v49 }
 0x44d   : > { %v942_v50 = vpop.f32.mrf.mxu2 }
 0x450   : > { %v866_v51 = vpop.f32.mrf.mxu0 }
 0x455   : > { %v944_v52 = vpop.f32.mrf.mxu2 }
 0x458   : > { %v868_v53 = vpop.f32.mrf.mxu0 }
 0x45f   : > { %v885_v54 = vpop.f32.mrf.mxu1 }
 0x460   : > { %v886_v55 = vadd.f32 %v885_v54, %v866_v51 }
 0x466   : > { %v913_v56 = vpop.f32.mrf.mxu3 }
 0x467   : > { %v917_v57 = vadd.f32 %v913_v56, %v886_v55  ;;  %v887_v58 = vpop.f32.mrf.mxu1 }
 0x469   : > { %v946_v48 = vadd.f32 %v942_v50, %v917_v57 }
 0x46b   : > { %v951_v59 = vadd.f32 %v1281_v28, %v946_v48 }
 0x46d   : > { %v952_v60 = vpack.c.bf16 %v951_v59, %v951_v59 }
 0x46e   : > { %v915_v61 = vpop.f32.mrf.mxu3 }
 0x46f   : > { %954 = vst.msk [vmem:[%s433_s26] sm:$0xf] %vm486_vm2, %v952_v60 }
 0x470   : > { %1477 = shalt.err (!%p1474_p11)
}
 0x471   : > { %1179 = dma.vmem_to_hbm [thread:$0]  (%p1675_p4), %s970_s29, 64, %s972_s20, %s956_s27  }
 0x472 PF: > { %s1951_s24 = sld [smem:[#allocation20_spill]] }
 0x473   : > { %s1953_s23 = sld [smem:[#allocation23_spill]] }
 0x478   : > { %s983_s21 = sand.u32 1, %s1951_s24  }
 0x479   : > { %p1954_p12 = scmp.ge.s32.totalorder %s1953_s23, 2  ;;  %s984_s12 = scalar_lea.sflag [#allocation8], %s983_s21 }
 0x47b   : > { %p1199_p13 = pnand %p1954_p12, %p1683_p9 }
 0x47d   : > { %p1200_p0 = pneg %p1199_p13 }
 0x47f   : > { %1515 = dma.done.wait (%p1200_p0), %s984_s12, 64  }
 0x480   : > { %1517 = vsyncadd (%p1200_p0), %s984_s12, 4294967232  ;;  %s27_s29 = sadd.s32 1, %s1953_s23   ;;  %s1955_s30 = sld [smem:[#allocation21_spill]] }
 0x481   : > { %p24_p2 = scmp.ge.s32.totalorder %s27_s29, 4   ;;  %s1956_s26 = sld [smem:[#allocation26_spill]] }
 0x482   : > { %s1957_s27 = sld [smem:[#allocation22_spill]]  ;;  %s1959_s24 = smov %s1524_s25 }
 0x483   : > { %s1958_s28 = sld [smem:[#allocation24_spill]]  ;;  %26 = sbr.rel (!%p24_p2) target bundleno = 14 (0xe), region = 139 }
 0x486   : > { %s1960_s25 = smov %s1955_s30 }
 0x488   :  { %990 = vsyncpa [#allocation7], 1 }
 0x489   :  { %992 = vsyncpa [#allocation7 + $0x1], 1 }
 0x48a   :  { %993 = vsyncpa [#allocation10], 1 }
 0x48b   :  { %995 = vsyncpa [#allocation10 + $0x1], 1 }
 0x48c   :  { %996 = vsyncpa [#allocation13], 1 }
 0x48d   :  { %997 = vsyncpa [#allocation8], 1 }
 0x48e   :  { %999 = vsyncpa [#allocation8 + $0x1], 1 }

</bundles_post_ra>
